<compile_context>
chip_gen: v7x
topology: tpu7x:2x2x1
jax: 0.10.0
libtpu: 0.0.40
codegen_flags: <defaults>
</compile_context>

<pallas_src>
import jax
import jax.numpy as jnp
from jax.experimental import pallas as pl
from jax.experimental.pallas import tpu as pltpu


def lstm_kernel(x_ref, h0_ref, c0_ref, wih_ref, whh_ref, b_ref,
                wlin_ref, blin_ref, out_ref):
    B, H = h0_ref.shape
    BT, _ = x_ref.shape
    T = BT // B
    G = whh_ref.shape[1]                 # 4 * H

    w_hh = whh_ref[...]                  # (H, 4H), resident for the whole recurrence

    # ---- hoisted input projection: ONE MXU call for all T timesteps ----
    # (B*T, I) @ (I, 4H) + bias -> (B*T, 4H), then a layout-preserving split of the
    # leading (sublane) dim into (B, T, 4H).
    gates_x = (jnp.dot(x_ref[...], wih_ref[...],
                       preferred_element_type=jnp.float32)
               + b_ref[...])                               # (B*T, 4H)
    gates_x = gates_x.reshape(B, T, G)                     # (B, T, 4H)

    # Lane mask selecting the g-gate (tanh) lanes [2H, 3H) of the 4H-wide gate tile.
    lane = jax.lax.broadcasted_iota(jnp.int32, (B, G), 1)
    g_lanes = (lane >= 2 * H) & (lane < 3 * H)

    h = h0_ref[...]                      # (B, H) f32
    c = c0_ref[...]                      # (B, H) f32

    # ---- statically unrolled recurrence: only h @ W_hh is on the serial path ----
    for t in range(T):                   # T is a compile-time constant
        gates = gates_x[:, t, :] + jnp.dot(h, w_hh,
                                           preferred_element_type=jnp.float32)  # (B, 4H)
        # Full-width (128-lane) sigmoid/tanh on the EUP, then select tanh for g lanes.
        acts = jnp.where(g_lanes, jnp.tanh(gates), jax.nn.sigmoid(gates))
        i_g = acts[:, 0 * H:1 * H]       # PyTorch gate order: i, f, g, o
        f_g = acts[:, 1 * H:2 * H]
        g_g = acts[:, 2 * H:3 * H]
        o_g = acts[:, 3 * H:4 * H]
        c = f_g * c + i_g * g_g
        h = o_g * jnp.tanh(c)

    # output = Linear(lstm_out)[:, -1, :] == Linear(h_T); lane-dense padded V.
    out_ref[...] = (jnp.dot(h, wlin_ref[...], preferred_element_type=jnp.float32)
                    + blin_ref[...]).astype(out_ref.dtype)


def custom_lstm_forward(inputs, params, h0, c0):
    """inputs: (B, T) int32 token ids. Returns (B, vocab_size) float32."""
    emb_w = params["embedding"]          # (V, I)
    w_ih = params["w_ih"]                # (I, 4H)
    w_hh = params["w_hh"]                # (H, 4H)
    b = params["b"]                      # (1, 4H)  (bias_ih + bias_hh)
    w_lin = params["w_lin"]              # (H, V)
    b_lin = params["b_lin"]              # (1, V)

    B, T = inputs.shape
    I = emb_w.shape[1]
    H = w_hh.shape[0]
    V = w_lin.shape[1]
    V_pad = ((V + 127) // 128) * 128     # lane-dense output width

    # Embedding gather (wrapper glue). Stay batch-major; flatten (B,T,I)->(B*T,I)
    # (free reshape, no XLA transpose / extra HBM round trip).
    x2d = jnp.take(emb_w, inputs, axis=0).reshape(B * T, I)

    # Zero-pad the output projection so the kernel's final store is lane-dense.
    w_lin_p = jnp.zeros((H, V_pad), jnp.float32).at[:, :V].set(w_lin)
    b_lin_p = jnp.zeros((1, V_pad), jnp.float32).at[:, :V].set(b_lin)

    out_p = pl.pallas_call(
        lstm_kernel,
        out_shape=jax.ShapeDtypeStruct((B, V_pad), jnp.float32),
        grid_spec=pltpu.PrefetchScalarGridSpec(
            num_scalar_prefetch=0,
            grid=(1,),                                      # single invocation
            in_specs=[
                pl.BlockSpec((B * T, I), lambda i: (0, 0)),     # embedded x (flat)
                pl.BlockSpec((B, H), lambda i: (0, 0)),         # h0
                pl.BlockSpec((B, H), lambda i: (0, 0)),         # c0
                pl.BlockSpec((I, 4 * H), lambda i: (0, 0)),     # W_ih
                pl.BlockSpec((H, 4 * H), lambda i: (0, 0)),     # W_hh
                pl.BlockSpec((1, 4 * H), lambda i: (0, 0)),     # bias (ih + hh)
                pl.BlockSpec((H, V_pad), lambda i: (0, 0)),     # W_linear (padded)
                pl.BlockSpec((1, V_pad), lambda i: (0, 0)),     # b_linear (padded)
            ],
            out_specs=pl.BlockSpec((B, V_pad), lambda i: (0, 0)),
        ),
        compiler_params=pltpu.CompilerParams(
            dimension_semantics=("arbitrary",)),
    )(x2d, h0, c0, w_ih, w_hh, b, w_lin_p, b_lin_p)

    return out_p[:, :V]


def reference_forward(inputs, params, h0, c0):
    """Pure-JAX reference (lax.scan LSTM) for correctness checking."""
    emb_w = params["embedding"]
    w_ih, w_hh, b = params["w_ih"], params["w_hh"], params["b"]
    w_lin, b_lin = params["w_lin"], params["b_lin"]
    H = w_hh.shape[0]

    x = jnp.take(emb_w, inputs, axis=0)              # (B, T, I)
    x_tbi = jnp.transpose(x, (1, 0, 2))              # (T, B, I)

    def step(carry, x_t):
        h, c = carry
        gates = x_t @ w_ih + h @ w_hh + b
        i_g = jax.nn.sigmoid(gates[:, 0 * H:1 * H])
        f_g = jax.nn.sigmoid(gates[:, 1 * H:2 * H])
        g_g = jnp.tanh(gates[:, 2 * H:3 * H])
        o_g = jax.nn.sigmoid(gates[:, 3 * H:4 * H])
        c_new = f_g * c + i_g * g_g
        h_new = o_g * jnp.tanh(c_new)
        return (h_new, c_new), None

    (h_T, _), _ = jax.lax.scan(step, (h0, c0), x_tbi)
    return h_T @ w_lin + b_lin


if __name__ == "__main__":
    # Small shapes consistent with the module's forward.
    vocab_size = 50
    input_size = 16
    hidden_size = 32
    batch_size = 2
    seq_len = 8

    initrange = float(jnp.sqrt(1.0 / hidden_size))
    key = jax.random.PRNGKey(0)
    ks = jax.random.split(key, 10)

    def u(k, shape, rng=initrange):
        return jax.random.uniform(k, shape, jnp.float32, -rng, rng)

    params = {
        # nn.Embedding(vocab, input) with uniform(-initrange, initrange)
        "embedding": u(ks[0], (vocab_size, input_size)),
        # nn.LSTM weights (stored transposed: (in, 4H) / (H, 4H)); PyTorch default
        # init is uniform(-1/sqrt(H), 1/sqrt(H)).
        "w_ih": u(ks[1], (input_size, 4 * hidden_size)),
        "w_hh": u(ks[2], (hidden_size, 4 * hidden_size)),
        "b": u(ks[3], (1, 4 * hidden_size)) + u(ks[4], (1, 4 * hidden_size)),
        # nn.Linear(hidden, vocab) (stored transposed: (H, V))
        "w_lin": u(ks[5], (hidden_size, vocab_size)),
        "b_lin": u(ks[6], (1, vocab_size)),
    }

    # init_hidden / init_cell: uniform(-initrange, initrange), D*num_layers == 1.
    h0 = u(ks[7], (batch_size, hidden_size))
    c0 = u(ks[8], (batch_size, hidden_size))

    inputs = jax.random.randint(ks[9], (batch_size, seq_len), 0, vocab_size,
                                dtype=jnp.int32)

    out = custom_lstm_forward(inputs, params, h0, c0)
    out = jax.block_until_ready(out)

    ref = reference_forward(inputs, params, h0, c0)
    assert out.shape == (batch_size, vocab_size)
    assert jnp.allclose(out, ref, atol=1e-5, rtol=1e-5), "mismatch vs reference"

    print("KERNEL_OK")
</pallas_src>

<mosaic_0001>
module attributes {stable_mosaic.version = 11 : i64} {
  func.func @lstm_kernel(%arg0: i32, %arg1: memref<16x16xf32, #tpu.memory_space<vmem>>, %arg2: memref<2x32xf32, #tpu.memory_space<vmem>>, %arg3: memref<2x32xf32, #tpu.memory_space<vmem>>, %arg4: memref<16x128xf32, #tpu.memory_space<vmem>>, %arg5: memref<32x128xf32, #tpu.memory_space<vmem>>, %arg6: memref<1x128xf32, #tpu.memory_space<vmem>>, %arg7: memref<32x128xf32, #tpu.memory_space<vmem>>, %arg8: memref<1x128xf32, #tpu.memory_space<vmem>>, %arg9: memref<2x128xf32, #tpu.memory_space<vmem>>) attributes {dimension_semantics = [#tpu.dimension_semantics<arbitrary>], iteration_bounds = array<i64: 1>, scalar_prefetch = 0 : i64, scratch_operands = 0 : i64, tpu.core_type = #tpu.core_type<tc>, window_params = [{pipeline_mode = #tpu.pipeline_mode<synchronous>, transform_indices = @transform_0, window_bounds = array<i64: 16, 16>}, {pipeline_mode = #tpu.pipeline_mode<synchronous>, transform_indices = @transform_1, window_bounds = array<i64: 2, 32>}, {pipeline_mode = #tpu.pipeline_mode<synchronous>, transform_indices = @transform_2, window_bounds = array<i64: 2, 32>}, {pipeline_mode = #tpu.pipeline_mode<synchronous>, transform_indices = @transform_3, window_bounds = array<i64: 16, 128>}, {pipeline_mode = #tpu.pipeline_mode<synchronous>, transform_indices = @transform_4, window_bounds = array<i64: 32, 128>}, {pipeline_mode = #tpu.pipeline_mode<synchronous>, transform_indices = @transform_5, window_bounds = array<i64: 1, 128>}, {pipeline_mode = #tpu.pipeline_mode<synchronous>, transform_indices = @transform_6, window_bounds = array<i64: 32, 128>}, {pipeline_mode = #tpu.pipeline_mode<synchronous>, transform_indices = @transform_7, window_bounds = array<i64: 1, 128>}, {pipeline_mode = #tpu.pipeline_mode<synchronous>, transform_indices = @transform_8, window_bounds = array<i64: 2, 128>}]} {
    %c0 = arith.constant 0 : index
    %c0_0 = arith.constant 0 : index
    %0 = vector.load %arg5[%c0, %c0_0] : memref<32x128xf32, #tpu.memory_space<vmem>>, vector<32x128xf32>
    %c0_1 = arith.constant 0 : index
    %c0_2 = arith.constant 0 : index
    %1 = vector.load %arg1[%c0_1, %c0_2] : memref<16x16xf32, #tpu.memory_space<vmem>>, vector<16x16xf32>
    %c0_3 = arith.constant 0 : index
    %c0_4 = arith.constant 0 : index
    %2 = vector.load %arg4[%c0_3, %c0_4] : memref<16x128xf32, #tpu.memory_space<vmem>>, vector<16x128xf32>
    %cst = arith.constant dense<0.000000e+00> : vector<16x128xf32>
    %3 = tpu.matmul %1, %2, %cst {dimension_numbers = #tpu.dot_dimension_numbers<[1], [0], [0], [1], [0, 0, 1, 1], [], []>} : vector<16x16xf32>, vector<16x128xf32>, vector<16x128xf32> -> vector<16x128xf32>
    %c0_5 = arith.constant 0 : index
    %c0_6 = arith.constant 0 : index
    %4 = vector.load %arg6[%c0_5, %c0_6] : memref<1x128xf32, #tpu.memory_space<vmem>>, vector<1x128xf32>
    %5 = vector.broadcast %4 : vector<1x128xf32> to vector<16x128xf32>
    %6 = arith.addf %3, %5 : vector<16x128xf32>
    %7 = vector.shape_cast %6 : vector<16x128xf32> to vector<2x8x128xf32>
    %8 = tpu.iota {dimensions = array<i32: 1>} : vector<2x128xi32>
    %c64_i32 = arith.constant 64 : i32
    %9 = vector.broadcast %c64_i32 : i32 to vector<2x128xi32>
    %10 = arith.cmpi sge, %8, %9 : vector<2x128xi32>
    %c96_i32 = arith.constant 96 : i32
    %11 = vector.broadcast %c96_i32 : i32 to vector<2x128xi32>
    %12 = arith.cmpi slt, %8, %11 : vector<2x128xi32>
    %13 = arith.andi %10, %12 : vector<2x128xi1>
    %c0_7 = arith.constant 0 : index
    %c0_8 = arith.constant 0 : index
    %14 = vector.load %arg2[%c0_7, %c0_8] : memref<2x32xf32, #tpu.memory_space<vmem>>, vector<2x32xf32>
    %c0_9 = arith.constant 0 : index
    %c0_10 = arith.constant 0 : index
    %15 = vector.load %arg3[%c0_9, %c0_10] : memref<2x32xf32, #tpu.memory_space<vmem>>, vector<2x32xf32>
    %16 = vector.extract_strided_slice %7 {offsets = [0, 0, 0], sizes = [2, 1, 128], strides = [1, 1, 1]} : vector<2x8x128xf32> to vector<2x1x128xf32>
    %17 = vector.shape_cast %16 : vector<2x1x128xf32> to vector<2x128xf32>
    %cst_11 = arith.constant dense<0.000000e+00> : vector<2x128xf32>
    %18 = tpu.matmul %14, %0, %cst_11 {dimension_numbers = #tpu.dot_dimension_numbers<[1], [0], [0], [1], [0, 0, 1, 1], [], []>} : vector<2x32xf32>, vector<32x128xf32>, vector<2x128xf32> -> vector<2x128xf32>
    %19 = arith.addf %17, %18 : vector<2x128xf32>
    %20 = math.tanh %19 : vector<2x128xf32>
    %21 = arith.negf %19 : vector<2x128xf32>
    %22 = math.exp %21 : vector<2x128xf32>
    %cst_12 = arith.constant 1.000000e+00 : f32
    %23 = vector.broadcast %cst_12 : f32 to vector<2x128xf32>
    %24 = arith.addf %23, %22 : vector<2x128xf32>
    %25 = arith.divf %23, %24 : vector<2x128xf32>
    %26 = arith.select %13, %20, %25 : vector<2x128xi1>, vector<2x128xf32>
    %27 = vector.extract_strided_slice %26 {offsets = [0, 0], sizes = [2, 32], strides = [1, 1]} : vector<2x128xf32> to vector<2x32xf32>
    %28 = vector.extract_strided_slice %26 {offsets = [0, 32], sizes = [2, 32], strides = [1, 1]} : vector<2x128xf32> to vector<2x32xf32>
    %29 = vector.extract_strided_slice %26 {offsets = [0, 64], sizes = [2, 32], strides = [1, 1]} : vector<2x128xf32> to vector<2x32xf32>
    %30 = vector.extract_strided_slice %26 {offsets = [0, 96], sizes = [2, 32], strides = [1, 1]} : vector<2x128xf32> to vector<2x32xf32>
    %31 = arith.mulf %28, %15 : vector<2x32xf32>
    %32 = arith.mulf %27, %29 : vector<2x32xf32>
    %33 = arith.addf %31, %32 : vector<2x32xf32>
    %34 = math.tanh %33 : vector<2x32xf32>
    %35 = arith.mulf %30, %34 : vector<2x32xf32>
    %36 = vector.extract_strided_slice %7 {offsets = [0, 1, 0], sizes = [2, 1, 128], strides = [1, 1, 1]} : vector<2x8x128xf32> to vector<2x1x128xf32>
    %37 = vector.shape_cast %36 : vector<2x1x128xf32> to vector<2x128xf32>
    %cst_13 = arith.constant dense<0.000000e+00> : vector<2x128xf32>
    %38 = tpu.matmul %35, %0, %cst_13 {dimension_numbers = #tpu.dot_dimension_numbers<[1], [0], [0], [1], [0, 0, 1, 1], [], []>} : vector<2x32xf32>, vector<32x128xf32>, vector<2x128xf32> -> vector<2x128xf32>
    %39 = arith.addf %37, %38 : vector<2x128xf32>
    %40 = math.tanh %39 : vector<2x128xf32>
    %41 = arith.negf %39 : vector<2x128xf32>
    %42 = math.exp %41 : vector<2x128xf32>
    %cst_14 = arith.constant 1.000000e+00 : f32
    %43 = vector.broadcast %cst_14 : f32 to vector<2x128xf32>
    %44 = arith.addf %43, %42 : vector<2x128xf32>
    %45 = arith.divf %43, %44 : vector<2x128xf32>
    %46 = arith.select %13, %40, %45 : vector<2x128xi1>, vector<2x128xf32>
    %47 = vector.extract_strided_slice %46 {offsets = [0, 0], sizes = [2, 32], strides = [1, 1]} : vector<2x128xf32> to vector<2x32xf32>
    %48 = vector.extract_strided_slice %46 {offsets = [0, 32], sizes = [2, 32], strides = [1, 1]} : vector<2x128xf32> to vector<2x32xf32>
    %49 = vector.extract_strided_slice %46 {offsets = [0, 64], sizes = [2, 32], strides = [1, 1]} : vector<2x128xf32> to vector<2x32xf32>
    %50 = vector.extract_strided_slice %46 {offsets = [0, 96], sizes = [2, 32], strides = [1, 1]} : vector<2x128xf32> to vector<2x32xf32>
    %51 = arith.mulf %48, %33 : vector<2x32xf32>
    %52 = arith.mulf %47, %49 : vector<2x32xf32>
    %53 = arith.addf %51, %52 : vector<2x32xf32>
    %54 = math.tanh %53 : vector<2x32xf32>
    %55 = arith.mulf %50, %54 : vector<2x32xf32>
    %56 = vector.extract_strided_slice %7 {offsets = [0, 2, 0], sizes = [2, 1, 128], strides = [1, 1, 1]} : vector<2x8x128xf32> to vector<2x1x128xf32>
    %57 = vector.shape_cast %56 : vector<2x1x128xf32> to vector<2x128xf32>
    %cst_15 = arith.constant dense<0.000000e+00> : vector<2x128xf32>
    %58 = tpu.matmul %55, %0, %cst_15 {dimension_numbers = #tpu.dot_dimension_numbers<[1], [0], [0], [1], [0, 0, 1, 1], [], []>} : vector<2x32xf32>, vector<32x128xf32>, vector<2x128xf32> -> vector<2x128xf32>
    %59 = arith.addf %57, %58 : vector<2x128xf32>
    %60 = math.tanh %59 : vector<2x128xf32>
    %61 = arith.negf %59 : vector<2x128xf32>
    %62 = math.exp %61 : vector<2x128xf32>
    %cst_16 = arith.constant 1.000000e+00 : f32
    %63 = vector.broadcast %cst_16 : f32 to vector<2x128xf32>
    %64 = arith.addf %63, %62 : vector<2x128xf32>
    %65 = arith.divf %63, %64 : vector<2x128xf32>
    %66 = arith.select %13, %60, %65 : vector<2x128xi1>, vector<2x128xf32>
    %67 = vector.extract_strided_slice %66 {offsets = [0, 0], sizes = [2, 32], strides = [1, 1]} : vector<2x128xf32> to vector<2x32xf32>
    %68 = vector.extract_strided_slice %66 {offsets = [0, 32], sizes = [2, 32], strides = [1, 1]} : vector<2x128xf32> to vector<2x32xf32>
    %69 = vector.extract_strided_slice %66 {offsets = [0, 64], sizes = [2, 32], strides = [1, 1]} : vector<2x128xf32> to vector<2x32xf32>
    %70 = vector.extract_strided_slice %66 {offsets = [0, 96], sizes = [2, 32], strides = [1, 1]} : vector<2x128xf32> to vector<2x32xf32>
    %71 = arith.mulf %68, %53 : vector<2x32xf32>
    %72 = arith.mulf %67, %69 : vector<2x32xf32>
    %73 = arith.addf %71, %72 : vector<2x32xf32>
    %74 = math.tanh %73 : vector<2x32xf32>
    %75 = arith.mulf %70, %74 : vector<2x32xf32>
    %76 = vector.extract_strided_slice %7 {offsets = [0, 3, 0], sizes = [2, 1, 128], strides = [1, 1, 1]} : vector<2x8x128xf32> to vector<2x1x128xf32>
    %77 = vector.shape_cast %76 : vector<2x1x128xf32> to vector<2x128xf32>
    %cst_17 = arith.constant dense<0.000000e+00> : vector<2x128xf32>
    %78 = tpu.matmul %75, %0, %cst_17 {dimension_numbers = #tpu.dot_dimension_numbers<[1], [0], [0], [1], [0, 0, 1, 1], [], []>} : vector<2x32xf32>, vector<32x128xf32>, vector<2x128xf32> -> vector<2x128xf32>
    %79 = arith.addf %77, %78 : vector<2x128xf32>
    %80 = math.tanh %79 : vector<2x128xf32>
    %81 = arith.negf %79 : vector<2x128xf32>
    %82 = math.exp %81 : vector<2x128xf32>
    %cst_18 = arith.constant 1.000000e+00 : f32
    %83 = vector.broadcast %cst_18 : f32 to vector<2x128xf32>
    %84 = arith.addf %83, %82 : vector<2x128xf32>
    %85 = arith.divf %83, %84 : vector<2x128xf32>
    %86 = arith.select %13, %80, %85 : vector<2x128xi1>, vector<2x128xf32>
    %87 = vector.extract_strided_slice %86 {offsets = [0, 0], sizes = [2, 32], strides = [1, 1]} : vector<2x128xf32> to vector<2x32xf32>
    %88 = vector.extract_strided_slice %86 {offsets = [0, 32], sizes = [2, 32], strides = [1, 1]} : vector<2x128xf32> to vector<2x32xf32>
    %89 = vector.extract_strided_slice %86 {offsets = [0, 64], sizes = [2, 32], strides = [1, 1]} : vector<2x128xf32> to vector<2x32xf32>
    %90 = vector.extract_strided_slice %86 {offsets = [0, 96], sizes = [2, 32], strides = [1, 1]} : vector<2x128xf32> to vector<2x32xf32>
    %91 = arith.mulf %88, %73 : vector<2x32xf32>
    %92 = arith.mulf %87, %89 : vector<2x32xf32>
    %93 = arith.addf %91, %92 : vector<2x32xf32>
    %94 = math.tanh %93 : vector<2x32xf32>
    %95 = arith.mulf %90, %94 : vector<2x32xf32>
    %96 = vector.extract_strided_slice %7 {offsets = [0, 4, 0], sizes = [2, 1, 128], strides = [1, 1, 1]} : vector<2x8x128xf32> to vector<2x1x128xf32>
    %97 = vector.shape_cast %96 : vector<2x1x128xf32> to vector<2x128xf32>
    %cst_19 = arith.constant dense<0.000000e+00> : vector<2x128xf32>
    %98 = tpu.matmul %95, %0, %cst_19 {dimension_numbers = #tpu.dot_dimension_numbers<[1], [0], [0], [1], [0, 0, 1, 1], [], []>} : vector<2x32xf32>, vector<32x128xf32>, vector<2x128xf32> -> vector<2x128xf32>
    %99 = arith.addf %97, %98 : vector<2x128xf32>
    %100 = math.tanh %99 : vector<2x128xf32>
    %101 = arith.negf %99 : vector<2x128xf32>
    %102 = math.exp %101 : vector<2x128xf32>
    %cst_20 = arith.constant 1.000000e+00 : f32
    %103 = vector.broadcast %cst_20 : f32 to vector<2x128xf32>
    %104 = arith.addf %103, %102 : vector<2x128xf32>
    %105 = arith.divf %103, %104 : vector<2x128xf32>
    %106 = arith.select %13, %100, %105 : vector<2x128xi1>, vector<2x128xf32>
    %107 = vector.extract_strided_slice %106 {offsets = [0, 0], sizes = [2, 32], strides = [1, 1]} : vector<2x128xf32> to vector<2x32xf32>
    %108 = vector.extract_strided_slice %106 {offsets = [0, 32], sizes = [2, 32], strides = [1, 1]} : vector<2x128xf32> to vector<2x32xf32>
    %109 = vector.extract_strided_slice %106 {offsets = [0, 64], sizes = [2, 32], strides = [1, 1]} : vector<2x128xf32> to vector<2x32xf32>
    %110 = vector.extract_strided_slice %106 {offsets = [0, 96], sizes = [2, 32], strides = [1, 1]} : vector<2x128xf32> to vector<2x32xf32>
    %111 = arith.mulf %108, %93 : vector<2x32xf32>
    %112 = arith.mulf %107, %109 : vector<2x32xf32>
    %113 = arith.addf %111, %112 : vector<2x32xf32>
    %114 = math.tanh %113 : vector<2x32xf32>
    %115 = arith.mulf %110, %114 : vector<2x32xf32>
    %116 = vector.extract_strided_slice %7 {offsets = [0, 5, 0], sizes = [2, 1, 128], strides = [1, 1, 1]} : vector<2x8x128xf32> to vector<2x1x128xf32>
    %117 = vector.shape_cast %116 : vector<2x1x128xf32> to vector<2x128xf32>
    %cst_21 = arith.constant dense<0.000000e+00> : vector<2x128xf32>
    %118 = tpu.matmul %115, %0, %cst_21 {dimension_numbers = #tpu.dot_dimension_numbers<[1], [0], [0], [1], [0, 0, 1, 1], [], []>} : vector<2x32xf32>, vector<32x128xf32>, vector<2x128xf32> -> vector<2x128xf32>
    %119 = arith.addf %117, %118 : vector<2x128xf32>
    %120 = math.tanh %119 : vector<2x128xf32>
    %121 = arith.negf %119 : vector<2x128xf32>
    %122 = math.exp %121 : vector<2x128xf32>
    %cst_22 = arith.constant 1.000000e+00 : f32
    %123 = vector.broadcast %cst_22 : f32 to vector<2x128xf32>
    %124 = arith.addf %123, %122 : vector<2x128xf32>
    %125 = arith.divf %123, %124 : vector<2x128xf32>
    %126 = arith.select %13, %120, %125 : vector<2x128xi1>, vector<2x128xf32>
    %127 = vector.extract_strided_slice %126 {offsets = [0, 0], sizes = [2, 32], strides = [1, 1]} : vector<2x128xf32> to vector<2x32xf32>
    %128 = vector.extract_strided_slice %126 {offsets = [0, 32], sizes = [2, 32], strides = [1, 1]} : vector<2x128xf32> to vector<2x32xf32>
    %129 = vector.extract_strided_slice %126 {offsets = [0, 64], sizes = [2, 32], strides = [1, 1]} : vector<2x128xf32> to vector<2x32xf32>
    %130 = vector.extract_strided_slice %126 {offsets = [0, 96], sizes = [2, 32], strides = [1, 1]} : vector<2x128xf32> to vector<2x32xf32>
    %131 = arith.mulf %128, %113 : vector<2x32xf32>
    %132 = arith.mulf %127, %129 : vector<2x32xf32>
    %133 = arith.addf %131, %132 : vector<2x32xf32>
    %134 = math.tanh %133 : vector<2x32xf32>
    %135 = arith.mulf %130, %134 : vector<2x32xf32>
    %136 = vector.extract_strided_slice %7 {offsets = [0, 6, 0], sizes = [2, 1, 128], strides = [1, 1, 1]} : vector<2x8x128xf32> to vector<2x1x128xf32>
    %137 = vector.shape_cast %136 : vector<2x1x128xf32> to vector<2x128xf32>
    %cst_23 = arith.constant dense<0.000000e+00> : vector<2x128xf32>
    %138 = tpu.matmul %135, %0, %cst_23 {dimension_numbers = #tpu.dot_dimension_numbers<[1], [0], [0], [1], [0, 0, 1, 1], [], []>} : vector<2x32xf32>, vector<32x128xf32>, vector<2x128xf32> -> vector<2x128xf32>
    %139 = arith.addf %137, %138 : vector<2x128xf32>
    %140 = math.tanh %139 : vector<2x128xf32>
    %141 = arith.negf %139 : vector<2x128xf32>
    %142 = math.exp %141 : vector<2x128xf32>
    %cst_24 = arith.constant 1.000000e+00 : f32
    %143 = vector.broadcast %cst_24 : f32 to vector<2x128xf32>
    %144 = arith.addf %143, %142 : vector<2x128xf32>
    %145 = arith.divf %143, %144 : vector<2x128xf32>
    %146 = arith.select %13, %140, %145 : vector<2x128xi1>, vector<2x128xf32>
    %147 = vector.extract_strided_slice %146 {offsets = [0, 0], sizes = [2, 32], strides = [1, 1]} : vector<2x128xf32> to vector<2x32xf32>
    %148 = vector.extract_strided_slice %146 {offsets = [0, 32], sizes = [2, 32], strides = [1, 1]} : vector<2x128xf32> to vector<2x32xf32>
    %149 = vector.extract_strided_slice %146 {offsets = [0, 64], sizes = [2, 32], strides = [1, 1]} : vector<2x128xf32> to vector<2x32xf32>
    %150 = vector.extract_strided_slice %146 {offsets = [0, 96], sizes = [2, 32], strides = [1, 1]} : vector<2x128xf32> to vector<2x32xf32>
    %151 = arith.mulf %148, %133 : vector<2x32xf32>
    %152 = arith.mulf %147, %149 : vector<2x32xf32>
    %153 = arith.addf %151, %152 : vector<2x32xf32>
    %154 = math.tanh %153 : vector<2x32xf32>
    %155 = arith.mulf %150, %154 : vector<2x32xf32>
    %156 = vector.extract_strided_slice %7 {offsets = [0, 7, 0], sizes = [2, 1, 128], strides = [1, 1, 1]} : vector<2x8x128xf32> to vector<2x1x128xf32>
    %157 = vector.shape_cast %156 : vector<2x1x128xf32> to vector<2x128xf32>
    %cst_25 = arith.constant dense<0.000000e+00> : vector<2x128xf32>
    %158 = tpu.matmul %155, %0, %cst_25 {dimension_numbers = #tpu.dot_dimension_numbers<[1], [0], [0], [1], [0, 0, 1, 1], [], []>} : vector<2x32xf32>, vector<32x128xf32>, vector<2x128xf32> -> vector<2x128xf32>
    %159 = arith.addf %157, %158 : vector<2x128xf32>
    %160 = math.tanh %159 : vector<2x128xf32>
    %161 = arith.negf %159 : vector<2x128xf32>
    %162 = math.exp %161 : vector<2x128xf32>
    %cst_26 = arith.constant 1.000000e+00 : f32
    %163 = vector.broadcast %cst_26 : f32 to vector<2x128xf32>
    %164 = arith.addf %163, %162 : vector<2x128xf32>
    %165 = arith.divf %163, %164 : vector<2x128xf32>
    %166 = arith.select %13, %160, %165 : vector<2x128xi1>, vector<2x128xf32>
    %167 = vector.extract_strided_slice %166 {offsets = [0, 0], sizes = [2, 32], strides = [1, 1]} : vector<2x128xf32> to vector<2x32xf32>
    %168 = vector.extract_strided_slice %166 {offsets = [0, 32], sizes = [2, 32], strides = [1, 1]} : vector<2x128xf32> to vector<2x32xf32>
    %169 = vector.extract_strided_slice %166 {offsets = [0, 64], sizes = [2, 32], strides = [1, 1]} : vector<2x128xf32> to vector<2x32xf32>
    %170 = vector.extract_strided_slice %166 {offsets = [0, 96], sizes = [2, 32], strides = [1, 1]} : vector<2x128xf32> to vector<2x32xf32>
    %171 = arith.mulf %168, %153 : vector<2x32xf32>
    %172 = arith.mulf %167, %169 : vector<2x32xf32>
    %173 = arith.addf %171, %172 : vector<2x32xf32>
    %174 = math.tanh %173 : vector<2x32xf32>
    %175 = arith.mulf %170, %174 : vector<2x32xf32>
    %c0_27 = arith.constant 0 : index
    %c0_28 = arith.constant 0 : index
    %176 = vector.load %arg7[%c0_27, %c0_28] : memref<32x128xf32, #tpu.memory_space<vmem>>, vector<32x128xf32>
    %cst_29 = arith.constant dense<0.000000e+00> : vector<2x128xf32>
    %177 = tpu.matmul %175, %176, %cst_29 {dimension_numbers = #tpu.dot_dimension_numbers<[1], [0], [0], [1], [0, 0, 1, 1], [], []>} : vector<2x32xf32>, vector<32x128xf32>, vector<2x128xf32> -> vector<2x128xf32>
    %c0_30 = arith.constant 0 : index
    %c0_31 = arith.constant 0 : index
    %178 = vector.load %arg8[%c0_30, %c0_31] : memref<1x128xf32, #tpu.memory_space<vmem>>, vector<1x128xf32>
    %179 = vector.broadcast %178 : vector<1x128xf32> to vector<2x128xf32>
    %180 = arith.addf %177, %179 : vector<2x128xf32>
    %c0_32 = arith.constant 0 : index
    %c0_33 = arith.constant 0 : index
    %181 = vector.load %arg9[%c0_32, %c0_33] : memref<2x128xf32, #tpu.memory_space<vmem>>, vector<2x128xf32>
    tpu.vector_store %arg9[%c0_32, %c0_33], %180 {strides = array<i32>} : memref<2x128xf32, #tpu.memory_space<vmem>>, vector<2x128xf32>,
    return
  }
  func.func @transform_0(%arg0: i32) -> (i32, i32) {
    %c0_i32 = arith.constant 0 : i32
    %c0_i32_0 = arith.constant 0 : i32
    %c0_i32_1 = arith.constant 0 : i32
    return %c0_i32, %c0_i32_0 : i32, i32
  }
  func.func @transform_1(%arg0: i32) -> (i32, i32) {
    %c0_i32 = arith.constant 0 : i32
    %c0_i32_0 = arith.constant 0 : i32
    %c0_i32_1 = arith.constant 0 : i32
    return %c0_i32, %c0_i32_0 : i32, i32
  }
  func.func @transform_2(%arg0: i32) -> (i32, i32) {
    %c0_i32 = arith.constant 0 : i32
    %c0_i32_0 = arith.constant 0 : i32
    %c0_i32_1 = arith.constant 0 : i32
    return %c0_i32, %c0_i32_0 : i32, i32
  }
  func.func @transform_3(%arg0: i32) -> (i32, i32) {
    %c0_i32 = arith.constant 0 : i32
    %c0_i32_0 = arith.constant 0 : i32
    %c0_i32_1 = arith.constant 0 : i32
    return %c0_i32, %c0_i32_0 : i32, i32
  }
  func.func @transform_4(%arg0: i32) -> (i32, i32) {
    %c0_i32 = arith.constant 0 : i32
    %c0_i32_0 = arith.constant 0 : i32
    %c0_i32_1 = arith.constant 0 : i32
    return %c0_i32, %c0_i32_0 : i32, i32
  }
  func.func @transform_5(%arg0: i32) -> (i32, i32) {
    %c0_i32 = arith.constant 0 : i32
    %c0_i32_0 = arith.constant 0 : i32
    %c0_i32_1 = arith.constant 0 : i32
    return %c0_i32, %c0_i32_0 : i32, i32
  }
  func.func @transform_6(%arg0: i32) -> (i32, i32) {
    %c0_i32 = arith.constant 0 : i32
    %c0_i32_0 = arith.constant 0 : i32
    %c0_i32_1 = arith.constant 0 : i32
    return %c0_i32, %c0_i32_0 : i32, i32
  }
  func.func @transform_7(%arg0: i32) -> (i32, i32) {
    %c0_i32 = arith.constant 0 : i32
    %c0_i32_0 = arith.constant 0 : i32
    %c0_i32_1 = arith.constant 0 : i32
    return %c0_i32, %c0_i32_0 : i32, i32
  }
  func.func @transform_8(%arg0: i32) -> (i32, i32) {
    %c0_i32 = arith.constant 0 : i32
    %c0_i32_0 = arith.constant 0 : i32
    %c0_i32_1 = arith.constant 0 : i32
    return %c0_i32, %c0_i32_0 : i32, i32
  }
}

</mosaic_0001>

<bundles_post_ra>
// kernel: tpu_custom_call.1
= control target key start
LH: loop header
LB: loop body
LE: loop exit
PB: predicated region body
PF: predicated region fallthrough
CT: control target
= control target key end

     0   :  { %13 = vsyncpa [#allocation3], 0  ;;  %s2094_s0 = inlined_call_operand.hbm [shape: f32[16,16], index: 0, kind: input, shape index: {}]   ;;  %s2095_s1 = inlined_call_operand.vmem [shape: f32[2,32], index: 1, kind: input, shape index: {}]   ;;  %s2096_s2 = inlined_call_operand.vmem [shape: f32[2,32], index: 2, kind: input, shape index: {}]   ;;  %s2097_s3 = inlined_call_operand.hbm [shape: f32[16,128], index: 3, kind: input, shape index: {}]   ;;  %s2098_s4 = inlined_call_operand.hbm [shape: f32[32,128], index: 4, kind: input, shape index: {}]   ;;  %s2099_s5 = inlined_call_operand.vmem [shape: f32[1,128], index: 5, kind: input, shape index: {}]   ;;  %s2100_s6 = inlined_call_operand.hbm [shape: f32[32,128], index: 6, kind: input, shape index: {}]   ;;  %s2101_s7 = inlined_call_operand.vmem [shape: f32[1,128], index: 7, kind: input, shape index: {}]   ;;  %s2102_s8 = inlined_call_operand.hbm [shape: f32[2,128], index: 8, kind: output, shape index: {}]  }
   0x1   :  { %14 = vsyncpa [#allocation6], 0 }
   0x2   :  { %15 = vsyncpa [#allocation9], 0 }
   0x3   :  { %16 = vsyncpa [#allocation4], 0  ;;  %s1783_s27 = smov [#allocation5]   ;;  %s1784_s29 = smov [#allocation2]  }
   0x4   :  { %s38_s28 = sshll.u32 %s1783_s27, 4  ;;  %s22_s30 = sshll.u32 %s1784_s29, 4  ;;  %s39_s28 = int_to_ptr.vmem [resolvable:$true] %s38_s28  ;;  %s1840_s30 = int_to_ptr.vmem [resolvable:$true] %s22_s30 }
   0x5   :  { %s1665_s11 = scalar_lea.hbm %s2097_s3, 256 }
   0x6   :  { %p1666_p0 = scmp.ne.s32.totalorder %s2097_s3, %s1665_s11  ;;  %p1669_p1 = scmp.lt.u32.totalorder %s1665_s11, %s2097_s3 }
   0x8   :  { %p1671_p2 = pnand %p1669_p1, %p1666_p0 }
   0xa   :  { %1674 = shalt.err (!%p1671_p2)
}
   0xb   :  { %s1675_s16 = scalar_lea.vmem %s39_s28, 256  ;;  %p1680_p4 = scmp.lt.s32.totalorder %s39_s28, %s39_s28 }
   0xc   :  { %p1676_p3 = scmp.ne.s32.totalorder %s39_s28, %s1675_s16  ;;  %p1681_p5 = scmp.lt.s32.totalorder %s1675_s16, %s1675_s16 }
   0xe   :  { %p1682_p6 = por %p1681_p5, %p1680_p4 }
  0x10   :  { %p1683_p7 = pnand %p1682_p6, %p1676_p3 }
  0x12   :  { %1686 = shalt.err (!%p1683_p7)
}
  0x13   :  { %s1785_s17 = smov 128   ;;  %s1786_s18 = smov 8  }
  0x14   :  { %44 = dma.hbm_to_vmem [thread:$0]  %s2097_s3, 256, %s39_s28, [#allocation6], %s1785_s17, %s1785_s17, %s1786_s18  }
  0x15   :  { %s1687_s23 = scalar_lea.hbm %s2094_s0, 256 }
  0x16   :  { %p1688_p8 = scmp.ne.s32.totalorder %s2094_s0, %s1687_s23  ;;  %p1691_p9 = scmp.lt.u32.totalorder %s1687_s23, %s2094_s0 }
  0x18   :  { %p1693_p10 = pnand %p1691_p9, %p1688_p8 }
  0x1a   :  { %1696 = shalt.err (!%p1693_p10)
}
  0x1b   :  { %s1697_s29 = scalar_lea.vmem %s1840_s30, 256  ;;  %p1702_p12 = scmp.lt.s32.totalorder %s1840_s30, %s1840_s30 }
  0x1c   :  { %p1698_p11 = scmp.ne.s32.totalorder %s1840_s30, %s1697_s29  ;;  %p1703_p13 = scmp.lt.s32.totalorder %s1697_s29, %s1697_s29 }
  0x1e   :  { %p1704_p0 = por %p1703_p13, %p1702_p12 }
  0x20   :  { %p1705_p1 = pnand %p1704_p0, %p1698_p11 }
  0x22   :  { %1708 = shalt.err (!%p1705_p1)
}
  0x23   :  { %28 = dma.hbm_to_vmem [thread:$0]  %s2094_s0, 256, %s1840_s30, [#allocation3], %s1785_s17, %s1785_s17, %s1786_s18  }
  0x24   :  { %s1787_s9 = smov [#allocation7]   ;;  %s1788_s11 = smov [#allocation8]  }
  0x25   :  { %s50_s10 = sshll.u32 %s1787_s9, 4  ;;  %s64_s12 = sshll.u32 %s1788_s11, 4  ;;  %s51_s10 = int_to_ptr.vmem [resolvable:$true] %s50_s10  ;;  %s1877_s12 = int_to_ptr.vmem [resolvable:$true] %s64_s12 }
  0x26   :  { %s1709_s15 = scalar_lea.hbm %s2098_s4, 512 }
  0x27   :  { %p1710_p2 = scmp.ne.s32.totalorder %s2098_s4, %s1709_s15  ;;  %p1713_p3 = scmp.lt.u32.totalorder %s1709_s15, %s2098_s4 }
  0x29   :  { %p1715_p4 = pnand %p1713_p3, %p1710_p2 }
  0x2b   :  { %1718 = shalt.err (!%p1715_p4)
}
  0x2c   :  { %s1719_s0 = scalar_lea.vmem %s51_s10, 512  ;;  %p1724_p6 = scmp.lt.s32.totalorder %s51_s10, %s51_s10 }
  0x2d   :  { %p1720_p5 = scmp.ne.s32.totalorder %s51_s10, %s1719_s0  ;;  %p1725_p7 = scmp.lt.s32.totalorder %s1719_s0, %s1719_s0 }
  0x2f   :  { %p1726_p8 = por %p1725_p7, %p1724_p6 }
  0x31   :  { %p1727_p9 = pnand %p1726_p8, %p1720_p5 }
  0x33   :  { %1730 = shalt.err (!%p1727_p9)
}
  0x34   :  { %56 = dma.hbm_to_vmem [thread:$0]  %s2098_s4, 512, %s51_s10, [#allocation6], %s1785_s17, %s1785_s17, %s1786_s18  }
  0x35   :  { %s1731_s25 = scalar_lea.hbm %s2100_s6, 512 }
  0x36   :  { %p1732_p10 = scmp.ne.s32.totalorder %s2100_s6, %s1731_s25  ;;  %p1735_p11 = scmp.lt.u32.totalorder %s1731_s25, %s2100_s6 }
  0x38   :  { %p1737_p12 = pnand %p1735_p11, %p1732_p10 }
  0x3a   :  { %1740 = shalt.err (!%p1737_p12)
}
  0x3b   :  { %s1741_s28 = scalar_lea.vmem %s1877_s12, 512  ;;  %p1746_p0 = scmp.lt.s32.totalorder %s1877_s12, %s1877_s12 }
  0x3c   :  { %p1742_p13 = scmp.ne.s32.totalorder %s1877_s12, %s1741_s28  ;;  %p1747_p1 = scmp.lt.s32.totalorder %s1741_s28, %s1741_s28 }
  0x3e   :  { %p1748_p2 = por %p1747_p1, %p1746_p0 }
  0x40   :  { %p1749_p3 = pnand %p1748_p2, %p1742_p13 }
  0x42   :  { %1752 = shalt.err (!%p1749_p3)
}
  0x43   :  { %70 = dma.hbm_to_vmem [thread:$0]  %s2100_s6, 512, %s1877_s12, [#allocation9], %s1785_s17, %s1785_s17, %s1786_s18  }
  0x44   :  { %1775 = dma.done.wait [#allocation3], 256  }
  0x45   :  { %1776 = vsyncadd [#allocation3], 4294967040 }
  0x46   :  { %1777 = dma.done.wait [#allocation6], 768  }
  0x47   :  { %1778 = vsyncadd [#allocation6], 4294966528 }
  0x48   :  { %1779 = dma.done.wait [#allocation9], 512  }
  0x49   :  { %1780 = vsyncadd [#allocation9], 4294966784  ;;  %v1789_v0 = vmov 0.0|0.0   ;;  %vm1790_vm0 = vmmov 0   ;;  %v1791_v1 = vmov 0.0   ;;  %vm100_vm1 = vcmask 130048  }
  0x4a   :  { %1487 = vmatprep.subr.bf16.mxu1 %v1789_v0  ;;  %1392 = vmatprep.mubr.msk.f32.mxu1 %vm1790_vm0, %v1791_v1  ;;  %v91_v2 = vld [vmem:[#allocation5] sm:$0xff]  ;;  %v92_v3 = vld [vmem:[#allocation5 + $0x8] sm:$0xff]  ;;  %v85_v4 = vld [vmem:[#allocation7] sm:$0xff]  ;;  %vm189_vm2 = vcmask 261120   ;;  %v182_v30 = vlaneseq  ;;  %vm286_vm5 = vcmask 1041409   ;;  %s1793_s12 = smov 32  }
  0x4b   :  { %v1483_v5 = vpack.c.bf16 %v92_v3, %v91_v2  ;;  %v86_v6 = vld [vmem:[#allocation7 + $0x8] sm:$0xff]  ;;  %v89_v7 = vld [vmem:[#allocation2] sm:$0xff]  ;;  %v87_v9 = vld [vmem:[#allocation7 + $0x10] sm:$0xff]  ;;  %s1794_s14 = smov [#allocation10]  }
  0x4c   :  { %v1917_v8 = vpack.c.bf16 %v86_v6, %v85_v4  ;;  %1381 = vmatprep.mubr.msk.f32.mxu0 %vm100_vm1, %v89_v7  ;;  %v88_v10 = vld [vmem:[#allocation7 + $0x18] sm:$0xff]  ;;  %v90_v11 = vld [vmem:[#allocation2 + $0x8] sm:$0xff]  ;;  %v187_v13 = vld [vmem:[%s2095_s1] sm:$0x3]  ;;  %v183_v31 = vand.u32 127, %v182_v30  ;;  %s1288_s15 = sshll.u32 %s1794_s14, 4  ;;  %s1289_s15 = int_to_ptr.vmem [resolvable:$true] %s1288_s15 }
  0x4d   :  { %1484 = vmatprep.subr.bf16.mxu0 %v1483_v5  ;;  %v1921_v12 = vpack.c.bf16 %v88_v10, %v87_v9  ;;  %v1299_v14 = vld [vmem:[%s2099_s5] ss:$0 sm:$0xff]  ;;  %s1792_s5 = smov 64   ;;  %s1753_s16 = scalar_lea.vmem %s1289_s15, 32 }
  0x4e   :  { %1489 = vmatpush3.bf16.msra.mxu1 %v1917_v8  ;;  %1486 = vmatpush3.bf16.msra.mxu0 %v1483_v5  ;;  %vm184_vm3 = vcmp.ge.s32.totalorder %v183_v31, 64  ;;  %vm185_vm4 = vcmp.lt.s32.totalorder %v183_v31, 96  ;;  %v188_v42 = vld [vmem:[%s2096_s2] sm:$0x3]  ;;  %p1754_p4 = scmp.ne.s32.totalorder %s1289_s15, %s1753_s16  ;;  %p1758_p5 = scmp.lt.s32.totalorder %s1289_s15, %s1289_s15 }
  0x4f   :  { %1490 = vmatprep.subr.bf16.mxu1 %v1789_v0  ;;  %1493 = vmatprep.subr.bf16.mxu0 %v1789_v0  ;;  %vm1953_vm6 = vmand %vm184_vm3, %vm185_vm4  ;;  %p1759_p6 = scmp.lt.s32.totalorder %s1753_s16, %s1753_s16 }
  0x51   :  { %1382 = vmatmul.mubr.msk.f32.vlgmr.msra.gmra.mrb[0].mxu0 %vm100_vm1, %v90_v11  ;;  %p1760_p7 = por %p1759_p6, %p1758_p5 }
  0x52   :  { %1492 = vmatpush3.bf16.msra.mxu1 %v1921_v12  ;;  %1495 = vmatpush3.bf16.msra.mxu0 %v1917_v8 }
  0x53   :  { %1496 = vmatprep.subr.bf16.mxu0 %v1789_v0  ;;  %1403 = vmatprep.mubr.msk.f32.mxu0 %vm1790_vm0, %v1791_v1  ;;  %p1761_p8 = pnand %p1760_p7, %p1754_p4 }
  0x54   :  { %1499 = vmatprep.subr.bf16.mxu1 %v1789_v0 }
  0x55   :  { %1393 = vmatmul.mubr.msk.f32.vlgmr.msra.gmra.mrb[0].mxu1 %vm189_vm2, %v187_v13 }
  0x56   :  { %1498 = vmatpush3.bf16.msra.mxu0 %v1921_v12  ;;  %1501 = vmatpush3.bf16.msra.mxu1 %v1917_v8 }
  0x57   :  { %1502 = vmatprep.subr.bf16.mxu1 %v1789_v0  ;;  %1414 = vmatprep.mubr.msk.f32.mxu1 %vm1790_vm0, %v1791_v1 }
  0x58   :  { %1505 = vmatprep.subr.bf16.mxu0 %v1789_v0 }
  0x5a   :  { %1504 = vmatpush3.bf16.msra.mxu1 %v1921_v12 }
  0x5b   :  { %1511 = vmatprep.subr.bf16.mxu1 %v1789_v0 }
 0x124   :  { %v1383_v15 = vpop.f32.mrb[0].mxu0 }
 0x125   :  { %v173_v16 = vpop.f32.mrb[1].mxu0  ;;  %v1949_v18 = vadd.f32 %v1383_v15, %v1299_v14 }
 0x126   :  { %v1947_v17 = vadd.f32 %v1299_v14, %v173_v16 }
 0x128   :  { %v259_v19 = vpop.f32.mrb[0].mxu1 }
 0x129   :  { %v264_v20 = vrot.slane %v259_v19, 1  ;;  %v267_v21 = vadd.f32 %v259_v19, %v1947_v17  ;;  %v1394_v22 = vpop.f32.mrb[1].mxu1 }
 0x12b   :  { %v268_v23 = vadd.f32 %v264_v20, %v1949_v18  ;;  %v1303_v24 = vmul.f32 -1.442695, %v267_v21 }
 0x12d   :  { %v1304_v25 = vmul.f32 -1.442695, %v268_v23  ;;  %1553 = vpow2.f32 %v1303_v24 }
 0x12f   :  { %1555 = vpow2.f32 %v1304_v25 }
 0x130   :  { %1557 = vtanh.f32 %v268_v23 }
 0x137   :  { %v1554_v26 = vpop.eup %1553 }
 0x138   :  { %v277_v28 = vadd.f32 1.0, %v1554_v26 }
 0x139   :  { %v1556_v27 = vpop.eup %1555 }
 0x13a   :  { %v278_v29 = vadd.f32 1.0, %v1556_v27  ;;  %v1558_v32 = vpop.eup %1557 }
 0x13b   :  { %v285_v33 = vrot.slane %v1558_v32, 7 }
 0x13c   :  { %1559 = vrcp.f32 %v278_v29 }
 0x13d   :  { %1561 = vtanh.f32 %v267_v21 }
 0x13e   :  { %1563 = vrcp.f32 %v277_v28 }
 0x146   :  { %v1560_v34 = vpop.eup %1559 }
 0x147   :  { %v1562_v35 = vpop.eup %1561  ;;  %v291_v37 = vrot.slane %v1560_v34, 7 }
 0x148   :  { %v1564_v38 = vpop.eup %1563  ;;  %v287_v39 = vsel %vm286_vm5, %v285_v33, %v1562_v35 }
 0x149   :  { %v292_v40 = vsel %vm286_vm5, %v291_v37, %v1564_v38 }
 0x14a   :  { %v294_v41 = vsel %vm1953_vm6, %v287_v39, %v292_v40 }
 0x14b   :  { %301 = vrot.lane.b32.xlu0 %v294_v41, %s1792_s5 }
 0x14f   :  { %296 = vrot.lane.b32.xlu0 %v188_v42, %s1793_s12 }
 0x1bd   :  { %v302_v43 = vpop.permute.xlu0 %301 }
 0x1be   :  { %v304_v44 = vmul.f32 %v302_v43, %v294_v41 }
 0x1c0   :  { %306 = vrot.lane.b32.xlu1 %v304_v44, %s1793_s12 }
 0x1c1   :  { %v297_v45 = vpop.permute.xlu0 %296 }
 0x1c2   :  { %v299_v46 = vmul.f32 %v297_v45, %v294_v41 }
 0x232   :  { %v307_v47 = vpop.permute.xlu1 %306 }
 0x233   :  { %v309_v48 = vadd.f32 %v307_v47, %v299_v46 }
 0x235   :  { %1565 = vtanh.f32 %v309_v48 }
 0x23f   :  { %v1566_v49 = vpop.eup %1565 }
 0x240   :  { %312 = vrot.lane.b32.xlu1 %v1566_v49, %s1792_s5 }
 0x2b2   :  { %v313_v50 = vpop.permute.xlu1 %312 }
 0x2b3   :  { %v315_v51 = vmul.f32 %v313_v50, %v294_v41 }
 0x2b5   :  { %317 = vrot.lane.b32.xlu0 %v315_v51, %s1793_s12 }
 0x327   :  { %v318_v52 = vpop.permute.xlu0 %317 }
 0x328   :  { %1404 = vmatmul.mubr.msk.f32.vlgmr.msra.gmra.mrb[2].mxu0 %vm189_vm2, %v318_v52 }
 0x329   :  { %1507 = vmatpush3.bf16.msra.mxu0 %v1917_v8  ;;  %1425 = vmatprep.mubr.msk.f32.mxu0 %vm1790_vm0, %v1791_v1 }
 0x32a   :  { %1508 = vmatprep.subr.bf16.mxu0 %v1789_v0 }
 0x32d   :  { %1510 = vmatpush3.bf16.msra.mxu0 %v1921_v12 }
 0x32e   :  { %1517 = vmatprep.subr.bf16.mxu0 %v1789_v0 }
 0x3fb   :  { %v387_v53 = vpop.f32.mrb[2].mxu0 }
 0x3fc   :  { %v392_v54 = vrot.slane %v387_v53, 7  ;;  %v396_v55 = vadd.f32 %v387_v53, %v1949_v18  ;;  %v1405_v56 = vpop.f32.mrb[3].mxu0 }
 0x3fe   :  { %v395_v57 = vadd.f32 %v392_v54, %v1947_v17  ;;  %v1307_v58 = vmul.f32 -1.442695, %v396_v55 }
 0x400   :  { %v1306_v59 = vmul.f32 -1.442695, %v395_v57  ;;  %1567 = vpow2.f32 %v1307_v58 }
 0x402   :  { %1569 = vpow2.f32 %v1306_v59 }
 0x403   :  { %1571 = vtanh.f32 %v395_v57 }
 0x40a   :  { %v1568_v60 = vpop.eup %1567 }
 0x40b   :  { %v406_v63 = vadd.f32 1.0, %v1568_v60 }
 0x40c   :  { %v1570_v61 = vpop.eup %1569 }
 0x40d   :  { %v405_v62 = vadd.f32 1.0, %v1570_v61  ;;  %v1572_v2 = vpop.eup %1571 }
 0x40e   :  { %v413_v3 = vrot.slane %v1572_v2, 1 }
 0x40f   :  { %1573 = vrcp.f32 %v405_v62 }
 0x410   :  { %1575 = vtanh.f32 %v396_v55 }
 0x411   :  { %1577 = vrcp.f32 %v406_v63 }
 0x419   :  { %v1574_v4 = vpop.eup %1573 }
 0x41a   :  { %v1576_v5 = vpop.eup %1575  ;;  %v418_v6 = vrot.slane %v1574_v4, 1 }
 0x41b   :  { %v1578_v7 = vpop.eup %1577  ;;  %v414_v9 = vsel %vm286_vm5, %v1576_v5, %v413_v3 }
 0x41c   :  { %v419_v10 = vsel %vm286_vm5, %v1578_v7, %v418_v6 }
 0x41d   :  { %v421_v11 = vsel %vm1953_vm6, %v414_v9, %v419_v10 }
 0x41e   :  { %424 = vrot.lane.b32.xlu1 %v421_v11, %s1792_s5  ;;  %v422_v15 = vmul.f32 %v421_v11, %v309_v48 }
 0x490   :  { %v425_v13 = vpop.permute.xlu1 %424 }
 0x491   :  { %v427_v14 = vmul.f32 %v425_v13, %v421_v11 }
 0x493   :  { %429 = vrot.lane.b32.xlu0 %v427_v14, %s1793_s12 }
 0x505   :  { %v430_v16 = vpop.permute.xlu0 %429 }
 0x506   :  { %v432_v19 = vadd.f32 %v430_v16, %v422_v15 }
 0x508   :  { %1579 = vtanh.f32 %v432_v19 }
 0x512   :  { %v1580_v20 = vpop.eup %1579 }
 0x513   :  { %435 = vrot.lane.b32.xlu1 %v1580_v20, %s1792_s5 }
 0x585   :  { %v436_v21 = vpop.permute.xlu1 %435 }
 0x586   :  { %v438_v22 = vmul.f32 %v436_v21, %v421_v11 }
 0x588   :  { %440 = vrot.lane.b32.xlu0 %v438_v22, %s1793_s12 }
 0x5fa   :  { %v441_v23 = vpop.permute.xlu0 %440 }
 0x5fb   :  { %1415 = vmatmul.mubr.msk.f32.vlgmr.msra.gmra.mrb[2].mxu1 %vm189_vm2, %v441_v23 }
 0x5fc   :  { %1513 = vmatpush3.bf16.msra.mxu1 %v1917_v8  ;;  %1436 = vmatprep.mubr.msk.f32.mxu1 %vm1790_vm0, %v1791_v1 }
 0x5fd   :  { %1514 = vmatprep.subr.bf16.mxu1 %v1789_v0 }
 0x600   :  { %1516 = vmatpush3.bf16.msra.mxu1 %v1921_v12 }
 0x601   :  { %1523 = vmatprep.subr.bf16.mxu1 %v1789_v0 }
 0x6ce   :  { %v510_v24 = vpop.f32.mrb[2].mxu1 }
 0x6cf   :  { %v515_v25 = vrot.slane %v510_v24, 6  ;;  %v516_v26 = vrot.slane %v510_v24, 7  ;;  %v1416_v27 = vpop.f32.mrb[3].mxu1 }
 0x6d1   :  { %v519_v28 = vadd.f32 %v515_v25, %v1947_v17  ;;  %v520_v29 = vadd.f32 %v516_v26, %v1949_v18 }
 0x6d3   :  { %v1309_v30 = vmul.f32 -1.442695, %v519_v28  ;;  %v1310_v31 = vmul.f32 -1.442695, %v520_v29 }
 0x6d5   :  { %1581 = vpow2.f32 %v1309_v30 }
 0x6d6   :  { %1583 = vpow2.f32 %v1310_v31 }
 0x6d7   :  { %1585 = vtanh.f32 %v519_v28 }
 0x6d8   :  { %1587 = vtanh.f32 %v520_v29 }
 0x6df   :  { %v1582_v32 = vpop.eup %1581 }
 0x6e0   :  { %v1584_v33 = vpop.eup %1583  ;;  %v529_v34 = vadd.f32 1.0, %v1582_v32 }
 0x6e1   :  { %v530_v35 = vadd.f32 1.0, %v1584_v33  ;;  %v1586_v37 = vpop.eup %1585 }
 0x6e2   :  { %1589 = vrcp.f32 %v529_v34  ;;  %v1588_v38 = vpop.eup %1587  ;;  %v537_v40 = vrot.slane %v1586_v37, 2 }
 0x6e3   :  { %1591 = vrcp.f32 %v530_v35  ;;  %v538_v41 = vrot.slane %v1588_v38, 1 }
 0x6e5   :  { %v539_v45 = vsel %vm286_vm5, %v538_v41, %v537_v40 }
 0x6ec   :  { %v1590_v39 = vpop.eup %1589 }
 0x6ed   :  { %v1592_v42 = vpop.eup %1591  ;;  %v543_v43 = vrot.slane %v1590_v39, 2 }
 0x6ee   :  { %v544_v44 = vrot.slane %v1592_v42, 1 }
 0x6f0   :  { %v545_v46 = vsel %vm286_vm5, %v544_v44, %v543_v43 }
 0x6f1   :  { %v547_v47 = vsel %vm1953_vm6, %v539_v45, %v545_v46 }
 0x6f2   :  { %550 = vrot.lane.b32.xlu1 %v547_v47, %s1792_s5  ;;  %v548_v50 = vmul.f32 %v547_v47, %v432_v19 }
 0x764   :  { %v551_v48 = vpop.permute.xlu1 %550 }
 0x765   :  { %v553_v49 = vmul.f32 %v551_v48, %v547_v47 }
 0x767   :  { %555 = vrot.lane.b32.xlu0 %v553_v49, %s1793_s12 }
 0x7d9   :  { %v556_v51 = vpop.permute.xlu0 %555 }
 0x7da   :  { %v558_v52 = vadd.f32 %v556_v51, %v548_v50 }
 0x7dc   :  { %1593 = vtanh.f32 %v558_v52 }
 0x7e6   :  { %v1594_v53 = vpop.eup %1593 }
 0x7e7   :  { %561 = vrot.lane.b32.xlu1 %v1594_v53, %s1792_s5 }
 0x859   :  { %v562_v54 = vpop.permute.xlu1 %561 }
 0x85a   :  { %v564_v55 = vmul.f32 %v562_v54, %v547_v47 }
 0x85c   :  { %566 = vrot.lane.b32.xlu0 %v564_v55, %s1793_s12 }
 0x8ce   :  { %v567_v56 = vpop.permute.xlu0 %566 }
 0x8cf   :  { %1426 = vmatmul.mubr.msk.f32.vlgmr.msra.gmra.mrb[4].mxu0 %vm189_vm2, %v567_v56 }
 0x8d0   :  { %1519 = vmatpush3.bf16.msra.mxu0 %v1917_v8  ;;  %1447 = vmatprep.mubr.msk.f32.mxu0 %vm1790_vm0, %v1791_v1 }
 0x8d1   :  { %1520 = vmatprep.subr.bf16.mxu0 %v1789_v0 }
 0x8d4   :  { %1522 = vmatpush3.bf16.msra.mxu0 %v1921_v12 }
 0x8d5   :  { %1529 = vmatprep.subr.bf16.mxu0 %v1789_v0 }
 0x9a2   :  { %v636_v57 = vpop.f32.mrb[4].mxu0 }
 0x9a3   :  { %v641_v58 = vrot.slane %v636_v57, 5  ;;  %v642_v59 = vrot.slane %v636_v57, 6  ;;  %v1427_v60 = vpop.f32.mrb[5].mxu0 }
 0x9a5   :  { %v645_v61 = vadd.f32 %v641_v58, %v1947_v17  ;;  %v646_v62 = vadd.f32 %v642_v59, %v1949_v18 }
 0x9a7   :  { %v1312_v63 = vmul.f32 -1.442695, %v645_v61  ;;  %v1313_v2 = vmul.f32 -1.442695, %v646_v62 }
 0x9a9   :  { %1595 = vpow2.f32 %v1312_v63 }
 0x9aa   :  { %1597 = vpow2.f32 %v1313_v2 }
 0x9ab   :  { %1599 = vtanh.f32 %v645_v61 }
 0x9ac   :  { %1601 = vtanh.f32 %v646_v62 }
 0x9b3   :  { %v1596_v3 = vpop.eup %1595 }
 0x9b4   :  { %v1598_v4 = vpop.eup %1597  ;;  %v655_v5 = vadd.f32 1.0, %v1596_v3 }
 0x9b5   :  { %v656_v6 = vadd.f32 1.0, %v1598_v4  ;;  %v1600_v7 = vpop.eup %1599 }
 0x9b6   :  { %1603 = vrcp.f32 %v655_v5  ;;  %v1602_v9 = vpop.eup %1601  ;;  %v663_v11 = vrot.slane %v1600_v7, 3 }
 0x9b7   :  { %1605 = vrcp.f32 %v656_v6  ;;  %v664_v13 = vrot.slane %v1602_v9, 2 }
 0x9b9   :  { %v665_v19 = vsel %vm286_vm5, %v664_v13, %v663_v11 }
 0x9c0   :  { %v1604_v10 = vpop.eup %1603 }
 0x9c1   :  { %v1606_v14 = vpop.eup %1605  ;;  %v669_v15 = vrot.slane %v1604_v10, 3 }
 0x9c2   :  { %v670_v16 = vrot.slane %v1606_v14, 2 }
 0x9c4   :  { %v671_v20 = vsel %vm286_vm5, %v670_v16, %v669_v15 }
 0x9c5   :  { %v673_v21 = vsel %vm1953_vm6, %v665_v19, %v671_v20 }
 0x9c6   :  { %676 = vrot.lane.b32.xlu1 %v673_v21, %s1792_s5  ;;  %v674_v24 = vmul.f32 %v673_v21, %v558_v52 }
 0xa38   :  { %v677_v22 = vpop.permute.xlu1 %676 }
 0xa39   :  { %v679_v23 = vmul.f32 %v677_v22, %v673_v21 }
 0xa3b   :  { %681 = vrot.lane.b32.xlu0 %v679_v23, %s1793_s12 }
 0xaad   :  { %v682_v25 = vpop.permute.xlu0 %681 }
 0xaae   :  { %v684_v26 = vadd.f32 %v682_v25, %v674_v24 }
 0xab0   :  { %1607 = vtanh.f32 %v684_v26 }
 0xaba   :  { %v1608_v27 = vpop.eup %1607 }
 0xabb   :  { %687 = vrot.lane.b32.xlu1 %v1608_v27, %s1792_s5 }
 0xb2d   :  { %v688_v28 = vpop.permute.xlu1 %687 }
 0xb2e   :  { %v690_v29 = vmul.f32 %v688_v28, %v673_v21 }
 0xb30   :  { %692 = vrot.lane.b32.xlu0 %v690_v29, %s1793_s12 }
 0xba2   :  { %v693_v30 = vpop.permute.xlu0 %692 }
 0xba3   :  { %1437 = vmatmul.mubr.msk.f32.vlgmr.msra.gmra.mrb[4].mxu1 %vm189_vm2, %v693_v30 }
 0xba4   :  { %1525 = vmatpush3.bf16.msra.mxu1 %v1917_v8  ;;  %1458 = vmatprep.mubr.msk.f32.mxu1 %vm1790_vm0, %v1791_v1 }
 0xba5   :  { %1526 = vmatprep.subr.bf16.mxu1 %v1789_v0 }
 0xba8   :  { %1528 = vmatpush3.bf16.msra.mxu1 %v1921_v12 }
 0xba9   :  { %1535 = vmatprep.subr.bf16.mxu1 %v1789_v0 }
 0xc76   :  { %v762_v31 = vpop.f32.mrb[4].mxu1 }
 0xc77   :  { %v767_v32 = vrot.slane %v762_v31, 4  ;;  %v768_v33 = vrot.slane %v762_v31, 5  ;;  %v1438_v34 = vpop.f32.mrb[5].mxu1 }
 0xc79   :  { %v771_v35 = vadd.f32 %v767_v32, %v1947_v17  ;;  %v772_v37 = vadd.f32 %v768_v33, %v1949_v18 }
 0xc7b   :  { %v1315_v38 = vmul.f32 -1.442695, %v771_v35  ;;  %v1316_v39 = vmul.f32 -1.442695, %v772_v37 }
 0xc7d   :  { %1609 = vpow2.f32 %v1315_v38 }
 0xc7e   :  { %1611 = vpow2.f32 %v1316_v39 }
 0xc7f   :  { %1613 = vtanh.f32 %v771_v35 }
 0xc80   :  { %1615 = vtanh.f32 %v772_v37 }
 0xc87   :  { %v1610_v40 = vpop.eup %1609 }
 0xc88   :  { %v1612_v41 = vpop.eup %1611  ;;  %v781_v42 = vadd.f32 1.0, %v1610_v40 }
 0xc89   :  { %v782_v43 = vadd.f32 1.0, %v1612_v41  ;;  %v1614_v44 = vpop.eup %1613 }
 0xc8a   :  { %1617 = vrcp.f32 %v781_v42  ;;  %v1616_v45 = vpop.eup %1615  ;;  %v789_v47 = vrot.slane %v1614_v44, 4 }
 0xc8b   :  { %1619 = vrcp.f32 %v782_v43  ;;  %v790_v48 = vrot.slane %v1616_v45, 3 }
 0xc8d   :  { %v791_v52 = vsel %vm286_vm5, %v790_v48, %v789_v47 }
 0xc94   :  { %v1618_v46 = vpop.eup %1617 }
 0xc95   :  { %v1620_v49 = vpop.eup %1619  ;;  %v795_v50 = vrot.slane %v1618_v46, 4 }
 0xc96   :  { %v796_v51 = vrot.slane %v1620_v49, 3 }
 0xc98   :  { %v797_v53 = vsel %vm286_vm5, %v796_v51, %v795_v50 }
 0xc99   :  { %v799_v54 = vsel %vm1953_vm6, %v791_v52, %v797_v53 }
 0xc9a   :  { %802 = vrot.lane.b32.xlu1 %v799_v54, %s1792_s5  ;;  %v800_v57 = vmul.f32 %v799_v54, %v684_v26 }
 0xd0c   :  { %v803_v55 = vpop.permute.xlu1 %802 }
 0xd0d   :  { %v805_v56 = vmul.f32 %v803_v55, %v799_v54 }
 0xd0f   :  { %807 = vrot.lane.b32.xlu0 %v805_v56, %s1793_s12 }
 0xd81   :  { %v808_v58 = vpop.permute.xlu0 %807 }
 0xd82   :  { %v810_v59 = vadd.f32 %v808_v58, %v800_v57 }
 0xd84   :  { %1621 = vtanh.f32 %v810_v59 }
 0xd8e   :  { %v1622_v60 = vpop.eup %1621 }
 0xd8f   :  { %813 = vrot.lane.b32.xlu1 %v1622_v60, %s1792_s5 }
 0xe01   :  { %v814_v61 = vpop.permute.xlu1 %813 }
 0xe02   :  { %v816_v62 = vmul.f32 %v814_v61, %v799_v54 }
 0xe04   :  { %818 = vrot.lane.b32.xlu0 %v816_v62, %s1793_s12 }
 0xe76   :  { %v819_v63 = vpop.permute.xlu0 %818 }
 0xe77   :  { %1448 = vmatmul.mubr.msk.f32.vlgmr.msra.gmra.mrb[6].mxu0 %vm189_vm2, %v819_v63 }
 0xe78   :  { %1531 = vmatpush3.bf16.msra.mxu0 %v1917_v8  ;;  %1469 = vmatprep.mubr.msk.f32.mxu0 %vm1790_vm0, %v1791_v1 }
 0xe79   :  { %1532 = vmatprep.subr.bf16.mxu0 %v1789_v0 }
 0xe7c   :  { %1534 = vmatpush3.bf16.msra.mxu0 %v1921_v12 }
 0xf4a   :  { %v888_v2 = vpop.f32.mrb[6].mxu0 }
 0xf4b   :  { %v893_v3 = vrot.slane %v888_v2, 3  ;;  %v894_v4 = vrot.slane %v888_v2, 4  ;;  %v1449_v5 = vpop.f32.mrb[7].mxu0 }
 0xf4d   :  { %v897_v6 = vadd.f32 %v893_v3, %v1947_v17  ;;  %v898_v7 = vadd.f32 %v894_v4, %v1949_v18 }
 0xf4f   :  { %v1318_v9 = vmul.f32 -1.442695, %v897_v6  ;;  %v1319_v10 = vmul.f32 -1.442695, %v898_v7 }
 0xf51   :  { %1623 = vpow2.f32 %v1318_v9 }
 0xf52   :  { %1625 = vpow2.f32 %v1319_v10 }
 0xf53   :  { %1627 = vtanh.f32 %v897_v6 }
 0xf54   :  { %1629 = vtanh.f32 %v898_v7 }
 0xf5b   :  { %v1624_v8 = vpop.eup %1623 }
 0xf5c   :  { %v1626_v11 = vpop.eup %1625  ;;  %v907_v13 = vadd.f32 1.0, %v1624_v8 }
 0xf5d   :  { %v908_v14 = vadd.f32 1.0, %v1626_v11  ;;  %v1628_v12 = vpop.eup %1627 }
 0xf5e   :  { %1631 = vrcp.f32 %v907_v13  ;;  %v1630_v15 = vpop.eup %1629  ;;  %v915_v19 = vrot.slane %v1628_v12, 5 }
 0xf5f   :  { %1633 = vrcp.f32 %v908_v14  ;;  %v916_v20 = vrot.slane %v1630_v15, 4 }
 0xf61   :  { %v917_v24 = vsel %vm286_vm5, %v916_v20, %v915_v19 }
 0xf68   :  { %v1632_v16 = vpop.eup %1631 }
 0xf69   :  { %v1634_v21 = vpop.eup %1633  ;;  %v921_v22 = vrot.slane %v1632_v16, 5 }
 0xf6a   :  { %v922_v23 = vrot.slane %v1634_v21, 4 }
 0xf6c   :  { %v923_v25 = vsel %vm286_vm5, %v922_v23, %v921_v22 }
 0xf6d   :  { %v925_v26 = vsel %vm1953_vm6, %v917_v24, %v923_v25 }
 0xf6e   :  { %928 = vrot.lane.b32.xlu1 %v925_v26, %s1792_s5  ;;  %v926_v29 = vmul.f32 %v925_v26, %v810_v59 }
 0xfe0   :  { %v929_v27 = vpop.permute.xlu1 %928 }
 0xfe1   :  { %v931_v28 = vmul.f32 %v929_v27, %v925_v26 }
 0xfe3   :  { %933 = vrot.lane.b32.xlu0 %v931_v28, %s1793_s12 }
0x1055   :  { %v934_v30 = vpop.permute.xlu0 %933 }
0x1056   :  { %v936_v31 = vadd.f32 %v934_v30, %v926_v29 }
0x1058   :  { %1635 = vtanh.f32 %v936_v31 }
0x1062   :  { %v1636_v32 = vpop.eup %1635 }
0x1063   :  { %939 = vrot.lane.b32.xlu1 %v1636_v32, %s1792_s5 }
0x10d5   :  { %v940_v33 = vpop.permute.xlu1 %939 }
0x10d6   :  { %v942_v34 = vmul.f32 %v940_v33, %v925_v26 }
0x10d8   :  { %944 = vrot.lane.b32.xlu0 %v942_v34, %s1793_s12  ;;  %v1195_v34 = vld [vmem:[#allocation8] sm:$0xff] }
0x114a   :  { %v945_v35 = vpop.permute.xlu0 %944 }
0x114b   :  { %1459 = vmatmul.mubr.msk.f32.vlgmr.msra.gmra.mrb[6].mxu1 %vm189_vm2, %v945_v35  ;;  %v1196_v35 = vld [vmem:[#allocation8 + $0x8] sm:$0xff] }
0x114c   :  { %1480 = vmatprep.mubr.msk.f32.mxu1 %vm1790_vm0, %v1791_v1 }
0x121e   :  { %v1014_v37 = vpop.f32.mrb[6].mxu1 }
0x121f   :  { %v1019_v38 = vrot.slane %v1014_v37, 2  ;;  %v1020_v39 = vrot.slane %v1014_v37, 3  ;;  %v1460_v40 = vpop.f32.mrb[7].mxu1  ;;  %v1197_v37 = vld [vmem:[#allocation8 + $0x10] sm:$0xff] }
0x1221   :  { %v1023_v41 = vadd.f32 %v1019_v38, %v1947_v17  ;;  %v1024_v42 = vadd.f32 %v1020_v39, %v1949_v18  ;;  %v1536_v38 = vpack.c.bf16 %v1196_v35, %v1195_v34  ;;  %v1198_v39 = vld [vmem:[#allocation8 + $0x18] sm:$0xff] }
0x1222   :  { %v1539_v40 = vpack.c.bf16 %v1198_v39, %v1197_v37 }
0x1223   :  { %v1321_v43 = vmul.f32 -1.442695, %v1023_v41  ;;  %v1322_v44 = vmul.f32 -1.442695, %v1024_v42  ;;  %1537 = vmatpush3.bf16.msra.mxu1 %v1536_v38 }
0x1224   :  { %1538 = vmatprep.subr.bf16.mxu1 %v1789_v0 }
0x1225   :  { %1637 = vpow2.f32 %v1321_v43 }
0x1226   :  { %1639 = vpow2.f32 %v1322_v44  ;;  %v1326_v44 = vld [vmem:[%s2101_s7] ss:$0 sm:$0xff] }
0x1227   :  { %1641 = vtanh.f32 %v1023_v41  ;;  %1540 = vmatpush3.bf16.msra.mxu1 %v1539_v40 }
0x1228   :  { %1643 = vtanh.f32 %v1024_v42 }
0x122f   :  { %v1638_v45 = vpop.eup %1637 }
0x1230   :  { %v1640_v46 = vpop.eup %1639  ;;  %v1033_v47 = vadd.f32 1.0, %v1638_v45 }
0x1231   :  { %v1034_v48 = vadd.f32 1.0, %v1640_v46  ;;  %v1642_v1 = vpop.eup %1641 }
0x1232   :  { %1645 = vrcp.f32 %v1033_v47  ;;  %v1644_v49 = vpop.eup %1643  ;;  %v1041_v51 = vrot.slane %v1642_v1, 6 }
0x1233   :  { %1647 = vrcp.f32 %v1034_v48  ;;  %v1042_v52 = vrot.slane %v1644_v49, 5 }
0x1235   :  { %v1043_v56 = vsel %vm286_vm5, %v1042_v52, %v1041_v51 }
0x123c   :  { %v1646_v50 = vpop.eup %1645 }
0x123d   :  { %v1648_v53 = vpop.eup %1647  ;;  %v1047_v54 = vrot.slane %v1646_v50, 6 }
0x123e   :  { %v1048_v55 = vrot.slane %v1648_v53, 5 }
0x1240   :  { %v1049_v57 = vsel %vm286_vm5, %v1048_v55, %v1047_v54 }
0x1241   :  { %v1051_v58 = vsel %vm1953_vm6, %v1043_v56, %v1049_v57 }
0x1242   :  { %1054 = vrot.lane.b32.xlu1 %v1051_v58, %s1792_s5  ;;  %v1052_v61 = vmul.f32 %v1051_v58, %v936_v31 }
0x12b4   :  { %v1055_v59 = vpop.permute.xlu1 %1054 }
0x12b5   :  { %v1057_v60 = vmul.f32 %v1055_v59, %v1051_v58 }
0x12b7   :  { %1059 = vrot.lane.b32.xlu0 %v1057_v60, %s1793_s12 }
0x1329   :  { %v1060_v62 = vpop.permute.xlu0 %1059 }
0x132a   :  { %v1062_v63 = vadd.f32 %v1060_v62, %v1052_v61 }
0x132c   :  { %1649 = vtanh.f32 %v1062_v63 }
0x1336   :  { %v1650_v2 = vpop.eup %1649 }
0x1337   :  { %1065 = vrot.lane.b32.xlu1 %v1650_v2, %s1792_s5 }
0x13a9   :  { %v1066_v3 = vpop.permute.xlu1 %1065 }
0x13aa   :  { %v1068_v4 = vmul.f32 %v1066_v3, %v1051_v58 }
0x13ac   :  { %1070 = vrot.lane.b32.xlu0 %v1068_v4, %s1793_s12 }
0x141e   :  { %v1071_v5 = vpop.permute.xlu0 %1070 }
0x141f   :  { %1470 = vmatmul.mubr.msk.f32.vlgmr.msra.gmra.mrb[8].mxu0 %vm189_vm2, %v1071_v5 }
0x14f2   :  { %v1140_v6 = vpop.f32.mrb[8].mxu0 }
0x14f3   :  { %v1145_v7 = vrot.slane %v1140_v6, 1  ;;  %v1146_v9 = vrot.slane %v1140_v6, 2  ;;  %v1471_v10 = vpop.f32.mrb[9].mxu0 }
0x14f5   :  { %v1149_v8 = vadd.f32 %v1145_v7, %v1947_v17  ;;  %v1150_v11 = vadd.f32 %v1146_v9, %v1949_v18 }
0x14f7   :  { %v1324_v13 = vmul.f32 -1.442695, %v1149_v8  ;;  %v1325_v14 = vmul.f32 -1.442695, %v1150_v11 }
0x14f9   :  { %1651 = vpow2.f32 %v1324_v13 }
0x14fa   :  { %1653 = vpow2.f32 %v1325_v14 }
0x14fb   :  { %1655 = vtanh.f32 %v1149_v8 }
0x14fc   :  { %1657 = vtanh.f32 %v1150_v11 }
0x1503   :  { %v1652_v12 = vpop.eup %1651 }
0x1504   :  { %v1654_v15 = vpop.eup %1653  ;;  %v1159_v16 = vadd.f32 1.0, %v1652_v12 }
0x1505   :  { %v1160_v19 = vadd.f32 1.0, %v1654_v15  ;;  %v1656_v20 = vpop.eup %1655 }
0x1506   :  { %1659 = vrcp.f32 %v1159_v16  ;;  %v1658_v21 = vpop.eup %1657  ;;  %v1167_v23 = vrot.slane %v1656_v20, 7 }
0x1507   :  { %1661 = vrcp.f32 %v1160_v19  ;;  %v1168_v24 = vrot.slane %v1658_v21, 6 }
0x1509   :  { %v1169_v26 = vsel %vm286_vm5, %v1168_v24, %v1167_v23 }
0x1510   :  { %v1660_v22 = vpop.eup %1659 }
0x1511   :  { %v1662_v17 = vpop.eup %1661  ;;  %v1173_v25 = vrot.slane %v1660_v22, 7 }
0x1512   :  { %v1174_v18 = vrot.slane %v1662_v17, 6 }
0x1514   :  { %v1175_v27 = vsel %vm286_vm5, %v1174_v18, %v1173_v25 }
0x1515   :  { %v1177_v28 = vsel %vm1953_vm6, %v1169_v26, %v1175_v27 }
0x1516   :  { %1180 = vrot.lane.b32.xlu1 %v1177_v28, %s1792_s5  ;;  %v1178_v31 = vmul.f32 %v1177_v28, %v1062_v63 }
0x1588   :  { %v1181_v29 = vpop.permute.xlu1 %1180 }
0x1589   :  { %v1183_v30 = vmul.f32 %v1181_v29, %v1177_v28 }
0x158b   :  { %1185 = vrot.lane.b32.xlu0 %v1183_v30, %s1793_s12 }
0x15fd   :  { %v1186_v32 = vpop.permute.xlu0 %1185 }
0x15fe   :  { %v1188_v33 = vadd.f32 %v1186_v32, %v1178_v31 }
0x1600   :  { %1663 = vtanh.f32 %v1188_v33 }
0x160a   :  { %v1664_v36 = vpop.eup %1663 }
0x160b   :  { %1191 = vrot.lane.b32.xlu1 %v1664_v36, %s1792_s5 }
0x167d   :  { %v1192_v41 = vpop.permute.xlu1 %1191 }
0x167e   :  { %v1194_v42 = vmul.f32 %v1192_v41, %v1177_v28 }
0x1680   :  { %1207 = vrot.lane.b32.xlu0 %v1194_v42, %s1793_s12 }
0x16f2   :  { %v1208_v43 = vpop.permute.xlu0 %1207 }
0x16f3   :  { %1481 = vmatmul.mubr.msk.f32.vlgmr.msra.gmra.mrb[8].mxu1 %vm189_vm2, %v1208_v43 }
0x17c6   :  { %v1277_v45 = vpop.f32.mrb[8].mxu1 }
0x17c7   :  { %v1278_v46 = vadd.f32 %v1326_v44, %v1277_v45  ;;  %v1482_v0 = vpop.f32.mrb[9].mxu1 }
0x17c9   :  { %1281 = vst [vmem:[#allocation10] sm:$0x3] %v1278_v46 }
0x17ca   :  { %1764 = shalt.err (!%p1761_p8)
}
0x17cb   :  { %s1765_s21 = scalar_lea.hbm %s2102_s8, 32 }
0x17cc   :  { %p1766_p9 = scmp.ne.s32.totalorder %s2102_s8, %s1765_s21  ;;  %p1769_p10 = scmp.lt.u32.totalorder %s1765_s21, %s2102_s8 }
0x17ce   :  { %p1771_p11 = pnand %p1769_p10, %p1766_p9 }
0x17d0   :  { %1774 = shalt.err (!%p1771_p11)
}
0x17d1   :  { %1291 = dma.vmem_to_hbm [thread:$0]  %s1289_s15, 32, %s2102_s8, [#allocation4]  }
0x17d2   :  { %1781 = dma.done.wait [#allocation4], 32  }
0x17d3   :  { %1782 = vsyncadd [#allocation4], 4294967264 }
0x17d4   :  { %1295 = vsyncpa [#allocation3], 1 }
0x17d5   :  { %1296 = vsyncpa [#allocation6], 1 }
0x17d6   :  { %1297 = vsyncpa [#allocation9], 1 }
0x17d7   :  { %1298 = vsyncpa [#allocation4], 1 }

</bundles_post_ra>
